<compile_context>
chip_gen: v5e
topology: v5e:2x2
jax: 0.10.0
libtpu: 0.0.40
codegen_flags: <defaults>
</compile_context>

<pallas_src>
import functools

import jax
import jax.numpy as jnp
from jax.experimental import pallas as pl
from jax.experimental.pallas import tpu as pltpu


def _losser_kernel(pred_ref, target_ref, pix_out_ref, tv_out_ref,
                   pix_acc, htv_acc, wtv_acc, *,
                   pixel_scale, tvh_scale, tvw_scale):
    i = pl.program_id(1)          # accumulation ("arbitrary") axis

    @pl.when(i == 0)
    def _init():
        pix_acc[...] = jnp.zeros_like(pix_acc)
        htv_acc[...] = jnp.zeros_like(htv_acc)
        wtv_acc[...] = jnp.zeros_like(wtv_acc)

    x = pred_ref[...]      # (bnc, H, W)
    t = target_ref[...]    # (bnc, H, W)
    # Cast only if needed (bf16 passthrough; no-op for f32 inputs).
    if x.dtype != jnp.float32:
        x = x.astype(jnp.float32)
    if t.dtype != jnp.float32:
        t = t.astype(jnp.float32)
    _, h, w = x.shape

    def _sum11(v):
        # (bnc, hh, ww) -> (1, 1): fold the untiled batch axis first (cheap
        # vreg adds), then one XLU reduction down to a single element.
        return jnp.sum(jnp.sum(v, axis=0), keepdims=True)

    # ---- pixel (L1) partial: per-step scalar reduction ----------------------
    pix_acc[...] += _sum11(jnp.abs(x - t))

    # ---- TV partials: sliced neighbour diffs, reduced per step ---------------
    dh = x[:, 1:, :] - x[:, :h - 1, :]
    dw = x[:, :, 1:] - x[:, :, :w - 1]
    htv_acc[...] += _sum11(dh * dh)
    wtv_acc[...] += _sum11(dw * dw)

    # ---- finalize: scaled scalar stores (one per core shard) -----------------
    @pl.when(i == pl.num_programs(1) - 1)
    def _finalize():
        pix11 = pixel_scale * pix_acc[...]
        tv11 = tvh_scale * htv_acc[...] + tvw_scale * wtv_acc[...]
        pix_out_ref[...] = pix11.reshape(1, 1, 1)
        tv_out_ref[...] = tv11.reshape(1, 1, 1)


def losser(pred, target, option_losses, *,
           target_block_bytes=2 * 1024 * 1024, num_core_shards=2):
    """JAX/Pallas equivalent of Losser.forward for the 'pix' + 'tv' config.

    Returns (total_loss, last_losses); last_losses holds the weight-scaled
    per-loss scalars, mirroring what the PyTorch module records.
    """
    w_pixel = float(option_losses["pix"]["weight"])
    w_tv = float(option_losses["tv"]["weight"])

    n, c, h, w = pred.shape
    if h < 2 or w < 2:
        raise ValueError(
            f"TV loss needs H >= 2 and W >= 2 (got H={h}, W={w}); "
            "count_h / count_w would be zero.")
    nc = n * c

    # Fold all normalisation / weighting into compile-time constants.
    pixel_scale = w_pixel / float(n * c * h * w)
    tvh_scale = 2.0 * w_tv / float(n * c * (h - 1) * w)
    tvw_scale = 2.0 * w_tv / float(n * c * h * (w - 1))

    itemsize = jnp.dtype(pred.dtype).itemsize
    image_bytes = h * w * itemsize

    # Leading "parallel" axis: 2 shards -> both TensorCores on v7x megacore;
    # plain serial split (negligible cost) on single-TC chips.
    p_shards = max(1, int(num_core_shards))
    per_core = -(-nc // p_shards)                      # ceil(nc / P)

    # Batch images per grid step so each input block is ~target_block_bytes.
    bnc = int(min(max(1, target_block_bytes // image_bytes), per_core))
    steps = -(-per_core // bnc)                        # inner grid length
    nc_padded = p_shards * steps * bnc

    pred3 = pred.reshape(nc, h, w)
    target3 = target.reshape(nc, h, w)
    if nc_padded != nc:
        # Zero images contribute exactly 0 to both the L1 and TV sums.
        pad = ((0, nc_padded - nc), (0, 0), (0, 0))
        pred3 = jnp.pad(pred3, pad)
        target3 = jnp.pad(target3, pad)

    kernel = functools.partial(
        _losser_kernel,
        pixel_scale=pixel_scale, tvh_scale=tvh_scale, tvw_scale=tvw_scale)

    block_bytes = bnc * image_bytes
    cost = pl.CostEstimate(
        flops=12 * nc_padded * h * w,
        transcendentals=0,
        bytes_accessed=2 * nc_padded * h * w * itemsize + 2 * p_shards * 4,
    )

    in_map = lambda p, i: (p * steps + i, 0, 0)
    out_map = lambda p, i: (p, 0, 0)

    pix, tv = pl.pallas_call(
        kernel,
        out_shape=(jax.ShapeDtypeStruct((p_shards, 1, 1), jnp.float32),
                   jax.ShapeDtypeStruct((p_shards, 1, 1), jnp.float32)),
        grid_spec=pltpu.PrefetchScalarGridSpec(
            num_scalar_prefetch=0,
            grid=(p_shards, steps),
            in_specs=[
                pl.BlockSpec((bnc, h, w), in_map),
                pl.BlockSpec((bnc, h, w), in_map),
            ],
            out_specs=(
                pl.BlockSpec((1, 1, 1), out_map),
                pl.BlockSpec((1, 1, 1), out_map),
            ),
            scratch_shapes=[
                pltpu.VMEM((1, 1), jnp.float32),   # sum |pred - target|
                pltpu.VMEM((1, 1), jnp.float32),   # sum dh^2
                pltpu.VMEM((1, 1), jnp.float32),   # sum dw^2
            ],
        ),
        compiler_params=pltpu.CompilerParams(
            # Leading axis sharded across cores; the accumulation axis carries
            # the scratch accumulators -> "arbitrary".
            dimension_semantics=("parallel", "arbitrary"),
            vmem_limit_bytes=32 * 1024 * 1024,
        ),
        cost_estimate=cost,
        # NOTE: if per-step DMA latency is exposed for very small H*W,
        # pipeline_mode=pl.Buffered(3) on the input specs is a cheap follow-up;
        # with ~2 MiB blocks double buffering already hides it.
    )(pred3, target3)

    # Reduce the per-core partial sums (already weight/normalisation scaled).
    pix_loss = jnp.sum(pix)
    tv_loss = jnp.sum(tv)
    last_losses = {"pix": pix_loss, "tv": tv_loss}
    total_loss = pix_loss + tv_loss
    return total_loss, last_losses


def _reference_losser(pred, target, option_losses):
    """Pure-JAX reference for verification."""
    w_pixel = option_losses["pix"]["weight"]
    w_tv = option_losses["tv"]["weight"]
    n, c, h, w = pred.shape
    pix = w_pixel * jnp.mean(jnp.abs(pred - target))
    h_tv = jnp.sum((pred[:, :, 1:, :] - pred[:, :, :-1, :]) ** 2)
    w_tv_sum = jnp.sum((pred[:, :, :, 1:] - pred[:, :, :, :-1]) ** 2)
    tv = w_tv * 2.0 * (h_tv / (c * (h - 1) * w) + w_tv_sum / (c * h * (w - 1))) / n
    return pix + tv, {"pix": pix, "tv": tv}


if __name__ == "__main__":
    key = jax.random.PRNGKey(0)
    k1, k2 = jax.random.split(key)

    # Small NCHW image-like inputs.  W=128 keeps the lane axis fully occupied;
    # unaligned widths/heights are handled by the same sliced-diff path.
    pred = jax.random.normal(k1, (2, 4, 16, 128), dtype=jnp.float32)
    target = jax.random.normal(k2, (2, 4, 16, 128), dtype=jnp.float32)

    option_losses = {
        "pix": {"loss_type": "pixel", "criterion": "l1", "weight": 1.0},
        "tv": {"loss_type": "tv", "criterion": None, "weight": 0.1},
    }

    total, last = losser(pred, target, option_losses)
    total = jax.block_until_ready(total)

    ref_total, ref_last = _reference_losser(pred, target, option_losses)
    ref_total = jax.block_until_ready(ref_total)

    assert jnp.allclose(total, ref_total, rtol=1e-5, atol=1e-5), (total, ref_total)
    assert jnp.allclose(last["pix"], ref_last["pix"], rtol=1e-5, atol=1e-5)
    assert jnp.allclose(last["tv"], ref_last["tv"], rtol=1e-5, atol=1e-5)

    print("KERNEL_OK")
</pallas_src>

<mosaic_0001>
module attributes {stable_mosaic.version = 11 : i64} {
  func.func @_losser_kernel(%arg0: i32, %arg1: i32, %arg2: memref<4x16x128xf32, #tpu.memory_space<vmem>>, %arg3: memref<4x16x128xf32, #tpu.memory_space<vmem>>, %arg4: memref<1x1x1xf32, #tpu.memory_space<vmem>>, %arg5: memref<1x1x1xf32, #tpu.memory_space<vmem>>, %arg6: memref<1x1xf32, #tpu.memory_space<vmem>>, %arg7: memref<1x1xf32, #tpu.memory_space<vmem>>, %arg8: memref<1x1xf32, #tpu.memory_space<vmem>>) attributes {dimension_semantics = [#tpu.dimension_semantics<parallel>, #tpu.dimension_semantics<arbitrary>], iteration_bounds = array<i64: 2, 1>, scalar_prefetch = 0 : i64, scratch_operands = 3 : i64, tpu.core_type = #tpu.core_type<tc>, window_params = [{transform_indices = @transform_0, window_bounds = array<i64: 4, 16, 128>}, {transform_indices = @transform_1, window_bounds = array<i64: 4, 16, 128>}, {transform_indices = @transform_2, window_bounds = array<i64: 1, 1, 1>}, {transform_indices = @transform_3, window_bounds = array<i64: 1, 1, 1>}]} {
    %c0_i32 = arith.constant 0 : i32
    %0 = arith.cmpi eq, %arg1, %c0_i32 : i32
    %1 = arith.extui %0 : i1 to i32
    %c0_i32_0 = arith.constant 0 : i32
    %2 = arith.cmpi ne, %1, %c0_i32_0 : i32
    scf.if %2 {
      %cst_25 = arith.constant 0.000000e+00 : f32
      %45 = vector.broadcast %cst_25 : f32 to vector<1x1xf32>
      %c0_26 = arith.constant 0 : index
      %c0_27 = arith.constant 0 : index
      %46 = vector.load %arg6[%c0_26, %c0_27] : memref<1x1xf32, #tpu.memory_space<vmem>>, vector<1x1xf32>
      tpu.vector_store %arg6[%c0_26, %c0_27], %45 {strides = array<i32>} : memref<1x1xf32, #tpu.memory_space<vmem>>, vector<1x1xf32>,
      %cst_28 = arith.constant 0.000000e+00 : f32
      %47 = vector.broadcast %cst_28 : f32 to vector<1x1xf32>
      %c0_29 = arith.constant 0 : index
      %c0_30 = arith.constant 0 : index
      %48 = vector.load %arg7[%c0_29, %c0_30] : memref<1x1xf32, #tpu.memory_space<vmem>>, vector<1x1xf32>
      tpu.vector_store %arg7[%c0_29, %c0_30], %47 {strides = array<i32>} : memref<1x1xf32, #tpu.memory_space<vmem>>, vector<1x1xf32>,
      %cst_31 = arith.constant 0.000000e+00 : f32
      %49 = vector.broadcast %cst_31 : f32 to vector<1x1xf32>
      %c0_32 = arith.constant 0 : index
      %c0_33 = arith.constant 0 : index
      %50 = vector.load %arg8[%c0_32, %c0_33] : memref<1x1xf32, #tpu.memory_space<vmem>>, vector<1x1xf32>
      tpu.vector_store %arg8[%c0_32, %c0_33], %49 {strides = array<i32>} : memref<1x1xf32, #tpu.memory_space<vmem>>, vector<1x1xf32>,
    } else {
    }
    %c0 = arith.constant 0 : index
    %c0_1 = arith.constant 0 : index
    %c0_2 = arith.constant 0 : index
    %3 = vector.load %arg2[%c0, %c0_1, %c0_2] : memref<4x16x128xf32, #tpu.memory_space<vmem>>, vector<4x16x128xf32>
    %c0_3 = arith.constant 0 : index
    %c0_4 = arith.constant 0 : index
    %c0_5 = arith.constant 0 : index
    %4 = vector.load %arg3[%c0_3, %c0_4, %c0_5] : memref<4x16x128xf32, #tpu.memory_space<vmem>>, vector<4x16x128xf32>
    %c0_6 = arith.constant 0 : index
    %c0_7 = arith.constant 0 : index
    %5 = vector.load %arg6[%c0_6, %c0_7] : memref<1x1xf32, #tpu.memory_space<vmem>>, vector<1x1xf32>
    %6 = arith.subf %3, %4 : vector<4x16x128xf32>
    %7 = math.absf %6 : vector<4x16x128xf32>
    %cst = arith.constant dense<0.000000e+00> : vector<16x128xf32>
    %8 = vector.multi_reduction <add>, %7, %cst [0] : vector<4x16x128xf32> to vector<16x128xf32>
    %9 = vector.shape_cast %8 : vector<16x128xf32> to vector<1x16x128xf32>
    %cst_8 = arith.constant dense<0.000000e+00> : vector<1xf32>
    %10 = vector.multi_reduction <add>, %9, %cst_8 [1, 2] : vector<1x16x128xf32> to vector<1xf32>
    %11 = vector.shape_cast %10 : vector<1xf32> to vector<1x1x1xf32>
    %12 = vector.extract %11[0, 0, 0] : f32 from vector<1x1x1xf32>
    %13 = vector.broadcast %12 : f32 to vector<1x1xf32>
    %14 = arith.addf %5, %13 : vector<1x1xf32>
    %c0_9 = arith.constant 0 : index
    %c0_10 = arith.constant 0 : index
    %15 = vector.load %arg6[%c0_9, %c0_10] : memref<1x1xf32, #tpu.memory_space<vmem>>, vector<1x1xf32>
    tpu.vector_store %arg6[%c0_9, %c0_10], %14 {strides = array<i32>} : memref<1x1xf32, #tpu.memory_space<vmem>>, vector<1x1xf32>,
    %16 = vector.extract_strided_slice %3 {offsets = [0, 1, 0], sizes = [4, 15, 128], strides = [1, 1, 1]} : vector<4x16x128xf32> to vector<4x15x128xf32>
    %17 = vector.extract_strided_slice %3 {offsets = [0, 0, 0], sizes = [4, 15, 128], strides = [1, 1, 1]} : vector<4x16x128xf32> to vector<4x15x128xf32>
    %18 = arith.subf %16, %17 : vector<4x15x128xf32>
    %19 = vector.extract_strided_slice %3 {offsets = [0, 0, 1], sizes = [4, 16, 127], strides = [1, 1, 1]} : vector<4x16x128xf32> to vector<4x16x127xf32>
    %20 = vector.extract_strided_slice %3 {offsets = [0, 0, 0], sizes = [4, 16, 127], strides = [1, 1, 1]} : vector<4x16x128xf32> to vector<4x16x127xf32>
    %21 = arith.subf %19, %20 : vector<4x16x127xf32>
    %c0_11 = arith.constant 0 : index
    %c0_12 = arith.constant 0 : index
    %22 = vector.load %arg7[%c0_11, %c0_12] : memref<1x1xf32, #tpu.memory_space<vmem>>, vector<1x1xf32>
    %23 = arith.mulf %18, %18 : vector<4x15x128xf32>
    %cst_13 = arith.constant dense<0.000000e+00> : vector<15x128xf32>
    %24 = vector.multi_reduction <add>, %23, %cst_13 [0] : vector<4x15x128xf32> to vector<15x128xf32>
    %25 = vector.shape_cast %24 : vector<15x128xf32> to vector<1x15x128xf32>
    %cst_14 = arith.constant dense<0.000000e+00> : vector<1xf32>
    %26 = vector.multi_reduction <add>, %25, %cst_14 [1, 2] : vector<1x15x128xf32> to vector<1xf32>
    %27 = vector.shape_cast %26 : vector<1xf32> to vector<1x1x1xf32>
    %28 = vector.extract %27[0, 0, 0] : f32 from vector<1x1x1xf32>
    %29 = vector.broadcast %28 : f32 to vector<1x1xf32>
    %30 = arith.addf %22, %29 : vector<1x1xf32>
    %c0_15 = arith.constant 0 : index
    %c0_16 = arith.constant 0 : index
    %31 = vector.load %arg7[%c0_15, %c0_16] : memref<1x1xf32, #tpu.memory_space<vmem>>, vector<1x1xf32>
    tpu.vector_store %arg7[%c0_15, %c0_16], %30 {strides = array<i32>} : memref<1x1xf32, #tpu.memory_space<vmem>>, vector<1x1xf32>,
    %c0_17 = arith.constant 0 : index
    %c0_18 = arith.constant 0 : index
    %32 = vector.load %arg8[%c0_17, %c0_18] : memref<1x1xf32, #tpu.memory_space<vmem>>, vector<1x1xf32>
    %33 = arith.mulf %21, %21 : vector<4x16x127xf32>
    %cst_19 = arith.constant dense<0.000000e+00> : vector<16x127xf32>
    %34 = vector.multi_reduction <add>, %33, %cst_19 [0] : vector<4x16x127xf32> to vector<16x127xf32>
    %35 = vector.shape_cast %34 : vector<16x127xf32> to vector<1x16x127xf32>
    %cst_20 = arith.constant dense<0.000000e+00> : vector<1xf32>
    %36 = vector.multi_reduction <add>, %35, %cst_20 [1, 2] : vector<1x16x127xf32> to vector<1xf32>
    %37 = vector.shape_cast %36 : vector<1xf32> to vector<1x1x1xf32>
    %38 = vector.extract %37[0, 0, 0] : f32 from vector<1x1x1xf32>
    %39 = vector.broadcast %38 : f32 to vector<1x1xf32>
    %40 = arith.addf %32, %39 : vector<1x1xf32>
    %c0_21 = arith.constant 0 : index
    %c0_22 = arith.constant 0 : index
    %41 = vector.load %arg8[%c0_21, %c0_22] : memref<1x1xf32, #tpu.memory_space<vmem>>, vector<1x1xf32>
    tpu.vector_store %arg8[%c0_21, %c0_22], %40 {strides = array<i32>} : memref<1x1xf32, #tpu.memory_space<vmem>>, vector<1x1xf32>,
    %c0_i32_23 = arith.constant 0 : i32
    %42 = arith.cmpi eq, %arg1, %c0_i32_23 : i32
    %43 = arith.extui %42 : i1 to i32
    %c0_i32_24 = arith.constant 0 : i32
    %44 = arith.cmpi ne, %43, %c0_i32_24 : i32
    scf.if %44 {
      %c0_25 = arith.constant 0 : index
      %c0_26 = arith.constant 0 : index
      %45 = vector.load %arg6[%c0_25, %c0_26] : memref<1x1xf32, #tpu.memory_space<vmem>>, vector<1x1xf32>
      %cst_27 = arith.constant 6.10351563E-5 : f32
      %46 = vector.broadcast %cst_27 : f32 to vector<1x1xf32>
      %47 = arith.mulf %46, %45 : vector<1x1xf32>
      %c0_28 = arith.constant 0 : index
      %c0_29 = arith.constant 0 : index
      %48 = vector.load %arg7[%c0_28, %c0_29] : memref<1x1xf32, #tpu.memory_space<vmem>>, vector<1x1xf32>
      %cst_30 = arith.constant 1.30208336E-5 : f32
      %49 = vector.broadcast %cst_30 : f32 to vector<1x1xf32>
      %50 = arith.mulf %49, %48 : vector<1x1xf32>
      %c0_31 = arith.constant 0 : index
      %c0_32 = arith.constant 0 : index
      %51 = vector.load %arg8[%c0_31, %c0_32] : memref<1x1xf32, #tpu.memory_space<vmem>>, vector<1x1xf32>
      %cst_33 = arith.constant 1.23031496E-5 : f32
      %52 = vector.broadcast %cst_33 : f32 to vector<1x1xf32>
      %53 = arith.mulf %52, %51 : vector<1x1xf32>
      %54 = arith.addf %50, %53 : vector<1x1xf32>
      %55 = vector.shape_cast %47 : vector<1x1xf32> to vector<1x1x1xf32>
      %c0_34 = arith.constant 0 : index
      %c0_35 = arith.constant 0 : index
      %c0_36 = arith.constant 0 : index
      %56 = vector.load %arg4[%c0_34, %c0_35, %c0_36] : memref<1x1x1xf32, #tpu.memory_space<vmem>>, vector<1x1x1xf32>
      tpu.vector_store %arg4[%c0_34, %c0_35, %c0_36], %55 {strides = array<i32>} : memref<1x1x1xf32, #tpu.memory_space<vmem>>, vector<1x1x1xf32>,
      %57 = vector.shape_cast %54 : vector<1x1xf32> to vector<1x1x1xf32>
      %c0_37 = arith.constant 0 : index
      %c0_38 = arith.constant 0 : index
      %c0_39 = arith.constant 0 : index
      %58 = vector.load %arg5[%c0_37, %c0_38, %c0_39] : memref<1x1x1xf32, #tpu.memory_space<vmem>>, vector<1x1x1xf32>
      tpu.vector_store %arg5[%c0_37, %c0_38, %c0_39], %57 {strides = array<i32>} : memref<1x1x1xf32, #tpu.memory_space<vmem>>, vector<1x1x1xf32>,
    } else {
    }
    return
  }
  func.func @transform_0(%arg0: i32, %arg1: i32) -> (i32, i32, i32) {
    %c1_i32 = arith.constant 1 : i32
    %0 = arith.muli %arg0, %c1_i32 : i32
    %1 = arith.addi %0, %arg1 : i32
    %c0_i32 = arith.constant 0 : i32
    %c0_i32_0 = arith.constant 0 : i32
    %c0_i32_1 = arith.constant 0 : i32
    return %1, %c0_i32, %c0_i32_0 : i32, i32, i32
  }
  func.func @transform_1(%arg0: i32, %arg1: i32) -> (i32, i32, i32) {
    %c1_i32 = arith.constant 1 : i32
    %0 = arith.muli %arg0, %c1_i32 : i32
    %1 = arith.addi %0, %arg1 : i32
    %c0_i32 = arith.constant 0 : i32
    %c0_i32_0 = arith.constant 0 : i32
    %c0_i32_1 = arith.constant 0 : i32
    return %1, %c0_i32, %c0_i32_0 : i32, i32, i32
  }
  func.func @transform_2(%arg0: i32, %arg1: i32) -> (i32, i32, i32) {
    %c0_i32 = arith.constant 0 : i32
    %c0_i32_0 = arith.constant 0 : i32
    %c0_i32_1 = arith.constant 0 : i32
    return %arg0, %c0_i32, %c0_i32_0 : i32, i32, i32
  }
  func.func @transform_3(%arg0: i32, %arg1: i32) -> (i32, i32, i32) {
    %c0_i32 = arith.constant 0 : i32
    %c0_i32_0 = arith.constant 0 : i32
    %c0_i32_1 = arith.constant 0 : i32
    return %arg0, %c0_i32, %c0_i32_0 : i32, i32, i32
  }
}

</mosaic_0001>

<bundles_post_ra>
// kernel: tpu_custom_call.1
= control target key start
LH: loop header
LB: loop body
LE: loop exit
PB: predicated region body
PF: predicated region fallthrough
CT: control target
= control target key end

     0   :  { %9 = vsyncpa [#allocation6], 0  ;;  %s1043_s0 = inlined_call_operand.hbm [shape: f32[8,16,128], index: 0, kind: input, shape index: {}]   ;;  %s1044_s1 = inlined_call_operand.hbm [shape: f32[8,16,128], index: 1, kind: input, shape index: {}]   ;;  %s1045_s2 = inlined_call_operand.vmem [shape: f32[2,1,1], index: 2, kind: output, shape index: {0}]   ;;  %s1046_s3 = inlined_call_operand.vmem [shape: f32[2,1,1], index: 3, kind: output, shape index: {1}]  }
   0x1   :  { %11 = vsyncpa [#allocation6 + $0x1], 0 }
   0x2   :  { %12 = vsyncpa [#allocation8], 0 }
   0x3   :  { %14 = vsyncpa [#allocation8 + $0x1], 0  ;;  %s846_s12 = smov 0   ;;  %s848_s13 = smov 0  }
   0x4   :  { %s850_s14 = smov 0   ;;  %s852_s15 = smov 0  }
   0x5   :  { %s854_s16 = smov 0   ;;  %s856_s17 = smov 0  }
   0x6 LB: > { %s613_s18 = sadd.s32 4294967295, %s819_s17   ;;  %s32_s19 = sadd.s32 1, %s815_s16  ;;  %s819_s17 = sphi %s856_s17, %s20_s17   ;;  %s815_s16 = sphi %s854_s16, %s1054_s16   ;;  %s811_s15 = sphi %s852_s15, %s1053_s15   ;;  %s807_s14 = sphi %s850_s14, %s1052_s14   ;;  %s803_s13 = sphi %s848_s13, %s1051_s13   ;;  %s799_s12 = sphi %s846_s12, %s1050_s12  }
   0x7   : > { %p34_p0 = scmp.ge.s32.totalorder %s32_s19, 2  ;;  %s41_s20 = sadd.s32 1, %s807_s14 }
   0x8   : > { %p48_p1 = scmp.ne.s32.totalorder %s807_s14, %s803_s13  ;;  %p49_p2 = scmp.eq.s32.totalorder %s819_s17, 0 }
   0x9   : > { %s1056_s19 = smov (%p34_p0, %s32_s19), 0  ;;  %p54_p4 = scmp.ne.s32.totalorder %s803_s13, %s799_s12 }
   0xa   : > { %p882_p3 = por %p49_p2, %p48_p1  ;;  %s38_s22 = ssub.s32 %s815_s16, %s1056_s19 }
   0xb   : > { %p55_p5 = scmp.eq.s32.totalorder %s613_s18, 0  ;;  %p39_p6 = scmp.eq.s32.totalorder %s38_s22, 0 }
   0xc   : > { %p651_p8 = scmp.lt.s32.totalorder %s819_s17, 2  ;;  %s898_s25 = sand.u32 1, %s807_s14  }
   0xd   : > { %p889_p7 = por %p55_p5, %p54_p4  ;;  %s631_s26 = sshll.u32 %s815_s16, 6 }
   0xe   : > { %s895_s24 = scalar_select %p39_p6, %s807_s14, %s41_s20  }
   0xf   : > { %s617_s27 = sshll.u32 %s898_s25, 6  ;;  %s169_s30 = scalar_lea.hbm %s1043_s0, %s631_s26 }
  0x10   : > { %s170_s4 = sshll.u32 %s169_s30, 4  ;;  %s162_s5 = scalar_lea.vmem [#allocation5], %s617_s27  ;;  %s171_s4 = int_to_ptr.hbm [resolvable:$true] %s170_s4 }
  0x11   : > { %s172_s6 = sshll.u32 %s162_s5, 4  ;;  %p907_p9 = pnand %p651_p8, %p882_p3  ;;  %s173_s6 = int_to_ptr.vmem [resolvable:$true] %s172_s6 }
  0x12   : > { %p625_p10 = scmp.ge.s32.totalorder %s819_s17, 1  ;;  %p204_p11 = scmp.lt.s32.totalorder %s819_s17, 3 }
  0x13   : > { %s159_s8 = scalar_lea.sflag [#allocation6], %s898_s25  ;;  %s821_s9 = smov 128  }
  0x14   : > { %s822_s10 = smov 8   ;;  %p205_p12 = pnand %p625_p10, %p204_p11 }
  0x15   : > { %647 = dma.hbm_to_vmem [thread:$0]  (!%p907_p9), %s171_s4, 1024, %s173_s6, %s159_s8, %s821_s9, %s821_s9, %s822_s10  }
  0x16   : > { %s193_s18 = scalar_lea.hbm %s1044_s1, %s631_s26  ;;  %s186_s21 = scalar_lea.vmem [#allocation7], %s617_s27 }
  0x17   : > { %s194_s20 = sshll.u32 %s193_s18, 4  ;;  %s196_s22 = sshll.u32 %s186_s21, 4  ;;  %s195_s20 = int_to_ptr.hbm [resolvable:$true] %s194_s20  ;;  %s197_s22 = int_to_ptr.vmem [resolvable:$true] %s196_s22 }
  0x18   : > { %s183_s28 = scalar_lea.sflag [#allocation8], %s898_s25  ;;  %208 = sbr.rel (%p205_p12) target bundleno = 483 (0x1e3), region = 28 }
  0x19   : > { %650 = dma.hbm_to_vmem [thread:$0]  (!%p907_p9), %s195_s20, 1024, %s197_s22, %s183_s28, %s821_s9, %s821_s9, %s822_s10  }
  0x1a   : > { %s210_s29 = sand.u32 (!%p205_p12), 1, %s803_s13  }
  0x1b   : > { %s626_s30 = sshll.u32 (!%p205_p12), %s210_s29, 6  ;;  %s211_s5 = scalar_lea.sflag (!%p205_p12), [#allocation6], %s210_s29 }
  0x1c   : > { %s214_s4 = scalar_lea.vmem (!%p205_p12), [#allocation5], %s626_s30 }
  0x1d   : > { %790 = dma.done.wait (%p889_p7), %s211_s5, 1024  }
  0x1e   : > { %792 = vsyncadd (%p889_p7), %s211_s5, 4294966272  ;;  %s221_s26 = scalar_lea.sflag [#allocation8], %s210_s29  ;;  %s927_s27 = scalar_lea.vmem [#allocation7], %s626_s30 }
  0x1f   : > { %794 = dma.done.wait (%p889_p7), %s221_s26, 1024  }
  0x20   : > { %796 = vsyncadd (%p889_p7), %s221_s26, 4294966272  ;;  %v933_v0 = vld [vmem:[%s214_s4 + $0x10] sm:$0xff]  ;;  %v935_v1 = vld [vmem:[%s214_s4] sm:$0xff]  ;;  %s823_s25 = smov 1   ;;  %vm445_vm0 = vcmask 1047560   ;;  %s824_s23 = smov 127  }
  0x21   : > { %366 = vrot.lane.b32.xlu1 %v933_v0, %s823_s25  ;;  %362 = vrot.lane.b32.xlu0 %v935_v1, %s823_s25  ;;  %v939_v2 = vld [vmem:[%s214_s4 + $0x20] sm:$0xff]  ;;  %v942_v3 = vld [vmem:[%s214_s4 + $0x18] sm:$0xff]  ;;  %v337_v46 = vrot.slane %v933_v0, 7  ;;  %v334_v47 = vrot.slane %v935_v1, 7  ;;  %vm333_vm1 = vcmask 1040384   ;;  %vm403_vm2 = vcmask 1047553  }
  0x22   : > { %370 = vrot.lane.b32.xlu2 %v939_v2, %s823_s25  ;;  %v944_v4 = vld [vmem:[%s214_s4 + $0x8] sm:$0xff]  ;;  %v951_v6 = vld [vmem:[%s214_s4 + $0x38] sm:$0xff]  ;;  %v953_v7 = vld [vmem:[%s214_s4 + $0x30] sm:$0xff]  ;;  %v340_v48 = vrot.slane %v939_v2, 7  ;;  %v338_v53 = vrot.slane %v942_v3, 7  ;;  %vm416_vm3 = vcmask 1046528  }
  0x23   : > { %v946_v5 = vld [vmem:[%s214_s4 + $0x28] sm:$0xff]  ;;  %v356_v49 = vsub.f32 %v933_v0, %v337_v46  ;;  %v354_v50 = vsub.f32 %v935_v1, %v334_v47  ;;  %v343_v51 = vrot.slane %v953_v7, 7  ;;  %v335_v54 = vrot.slane %v944_v4, 7  ;;  %p258_p13 = scmp.lt.s32.totalorder %s811_s15, 1 }
  0x24   : > { %v358_v52 = vsub.f32 %v939_v2, %v340_v48  ;;  %v344_v55 = vrot.slane %v951_v6, 7  ;;  %v341_v56 = vrot.slane %v946_v5, 7  ;;  %v339_v62 = vsel %vm333_vm1, %v337_v46, %v338_v53 }
  0x25   : > { %v397_v57 = vmul.f32 %v356_v49, %v356_v49  ;;  %v395_v58 = vmul.f32 %v354_v50, %v354_v50  ;;  %v360_v59 = vsub.f32 %v953_v7, %v343_v51  ;;  %v336_v61 = vsel %vm333_vm1, %v334_v47, %v335_v54  ;;  %s1058_s15 = smov (!%p258_p13, %s811_s15), 1 }
  0x26   : > { %v399_v60 = vmul.f32 %v358_v52, %v358_v52  ;;  %v342_v63 = vsel %vm333_vm1, %v340_v48, %v341_v56  ;;  %vm468_vm4 = vcmask 1039360   ;;  %vm268_vm5 = vcmask 0   ;;  %s260_s10 = scalar_lea.vmem %s1045_s2, %s1058_s15  ;;  %s263_s20 = scalar_lea.vmem %s1046_s3, %s1058_s15 }
  0x29   : > { %368 = vrot.lane.b32.xlu1 %v942_v3, %s823_s25  ;;  %364 = vrot.lane.b32.xlu0 %v944_v4, %s823_s25 }
  0x2a   : > { %372 = vrot.lane.b32.xlu2 %v946_v5, %s823_s25 }
  0x31   : > { %376 = vrot.lane.b32.xlu1 %v951_v6, %s823_s25  ;;  %374 = vrot.lane.b32.xlu0 %v953_v7, %s823_s25 }
  0x7c   : > { %v371_v8 = vpop.permute.xlu2 %370 }
  0x7d   : > { %v390_v14 = vsub.f32 %v939_v2, %v371_v8  ;;  %v345_v8 = vsel %vm333_vm1, %v343_v51, %v344_v55 }
  0x7f   : > { %v441_v24 = vmul.f32 %v390_v14, %v390_v14  ;;  %v401_v14 = vmul.f32 %v360_v59, %v360_v59 }
  0x81   : > { %v449_v34 = vsel %vm445_vm0, %v441_v24, 0.0  ;;  %v284_v24 = vld [vmem:[%s927_s27 + $0x20] sm:$0xff] }
  0x84   : > { %v373_v13 = vpop.permute.xlu2 %372 }
  0x85   : > { %v391_v17 = vsub.f32 %v946_v5, %v373_v13  ;;  %v280_v13 = vld [vmem:[%s927_s27] sm:$0xff] }
  0x87   : > { %v442_v25 = vmul.f32 %v391_v17, %v391_v17  ;;  %v281_v17 = vld [vmem:[%s927_s27 + $0x8] sm:$0xff] }
  0x89   : > { %v456_v35 = vsel %vm445_vm0, %v442_v25, 0.0  ;;  %v285_v25 = vld [vmem:[%s927_s27 + $0x28] sm:$0xff] }
  0x93   : > { %v367_v9 = vpop.permute.xlu1 %366  ;;  %v363_v10 = vpop.permute.xlu0 %362 }
  0x94   : > { %v388_v11 = vsub.f32 %v933_v0, %v367_v9  ;;  %v386_v12 = vsub.f32 %v935_v1, %v363_v10  ;;  %v355_v9 = vsub.f32 %v944_v4, %v336_v61  ;;  %v357_v10 = vsub.f32 %v942_v3, %v339_v62 }
  0x96   : > { %v439_v18 = vmul.f32 %v388_v11, %v388_v11  ;;  %v437_v19 = vmul.f32 %v386_v12, %v386_v12  ;;  %v359_v11 = vsub.f32 %v946_v5, %v342_v63  ;;  %v361_v12 = vsub.f32 %v951_v6, %v345_v8 }
  0x98   : > { %v447_v26 = vsel %vm445_vm0, %v439_v18, 0.0  ;;  %v446_v27 = vsel %vm445_vm0, %v437_v19, 0.0  ;;  %v282_v18 = vld [vmem:[%s927_s27 + $0x10] sm:$0xff]  ;;  %v283_v19 = vld [vmem:[%s927_s27 + $0x18] sm:$0xff] }
  0x99   : > { %v448_v30 = vadd.f32 %v447_v26, %v446_v27  ;;  %v286_v26 = vld [vmem:[%s927_s27 + $0x30] sm:$0xff]  ;;  %v402_v27 = vmul.f32 %v361_v12, %v361_v12 }
  0x9b   : > { %v369_v15 = vpop.permute.xlu1 %368  ;;  %v365_v16 = vpop.permute.xlu0 %364  ;;  %v450_v40 = vadd.f32 %v449_v34, %v448_v30  ;;  %v287_v30 = vld [vmem:[%s927_s27 + $0x38] sm:$0xff]  ;;  %v291_v34 = vsub.f32 %v933_v0, %v282_v18 }
  0x9c   : > { %v389_v20 = vsub.f32 %v942_v3, %v369_v15  ;;  %v387_v21 = vsub.f32 %v944_v4, %v365_v16  ;;  %v404_v15 = vsel %vm403_vm2, %v395_v58, 0.0  ;;  %v405_v16 = vsel %vm403_vm2, %v397_v57, 0.0 }
  0x9e   : > { %v440_v22 = vmul.f32 %v389_v20, %v389_v20  ;;  %v438_v23 = vmul.f32 %v387_v21, %v387_v21  ;;  %v396_v20 = vmul.f32 %v355_v9, %v355_v9  ;;  %v398_v21 = vmul.f32 %v357_v10, %v357_v10 }
  0xa0   : > { %v454_v28 = vsel %vm445_vm0, %v440_v22, 0.0  ;;  %v453_v29 = vsel %vm445_vm0, %v438_v23, 0.0  ;;  %v400_v22 = vmul.f32 %v359_v11, %v359_v11  ;;  %v407_v23 = vsel %vm403_vm2, %v399_v60, 0.0 }
  0xa1   : > { %v455_v31 = vadd.f32 %v454_v28, %v453_v29  ;;  %v406_v28 = vadd.f32 %v405_v16, %v404_v15  ;;  %v409_v29 = vsel %vm403_vm2, %v401_v14, 0.0 }
  0xa3   : > { %v377_v32 = vpop.permute.xlu1 %376  ;;  %v375_v33 = vpop.permute.xlu0 %374  ;;  %v457_v41 = vadd.f32 %v456_v35, %v455_v31  ;;  %v289_v31 = vsub.f32 %v935_v1, %v280_v13  ;;  %v292_v35 = vsub.f32 %v942_v3, %v283_v19  ;;  %v825_v19 = vmov 0.0  }
  0xa4   : > { %v393_v36 = vsub.f32 %v951_v6, %v377_v32  ;;  %v392_v37 = vsub.f32 %v953_v7, %v375_v33  ;;  %v411_v32 = vadd.f32 %v398_v21, %v396_v20  ;;  %v290_v33 = vsub.f32 %v944_v4, %v281_v17  ;;  %269 = vst.msk [vmem:[#allocation2] sm:$0x1] %vm268_vm5, %v825_v19 }
  0xa5   : > { %270 = vst.msk [vmem:[#allocation3] sm:$0x1] %vm268_vm5, %v825_v19 }
  0xa6   : > { %v444_v38 = vmul.f32 %v393_v36, %v393_v36  ;;  %v443_v39 = vmul.f32 %v392_v37, %v392_v37  ;;  %v408_v36 = vadd.f32 %v407_v23, %v406_v28  ;;  %v293_v37 = vsub.f32 %v939_v2, %v284_v24  ;;  %271 = vst.msk [vmem:[#allocation4] sm:$0x1] %vm268_vm5, %v825_v19 }
  0xa8   : > { %v458_v42 = vsel %vm445_vm0, %v444_v38, 0.0  ;;  %v451_v43 = vsel %vm445_vm0, %v443_v39, 0.0  ;;  %v294_v38 = vsub.f32 %v946_v5, %v285_v25  ;;  %v295_v39 = vsub.f32 %v953_v7, %v286_v26 }
  0xa9   : > { %v459_v44 = vadd.f32 %v458_v42, %v457_v41  ;;  %v452_v45 = vadd.f32 %v451_v43, %v450_v40  ;;  %v412_v40 = vadd.f32 %v411_v32, %v400_v22  ;;  %v296_v41 = vsub.f32 %v951_v6, %v287_v30 }
  0xaa   : > { %v297_v42 = vand.u32 2147483647, %v289_v31  ;;  %v298_v43 = vand.u32 2147483647, %v290_v33  ;;  %v410_v1 = vadd.f32 %v409_v29, %v408_v36  ;;  %v301_v4 = vand.u32 2147483647, %v293_v37 }
  0xab   : > { %464 = vrot.lane.b32.xlu0 %v459_v44, %s824_s23  ;;  %462 = vrot.lane.b32.xlu2 %v452_v45, %s824_s23  ;;  %v299_v44 = vand.u32 2147483647, %v291_v34  ;;  %v300_v45 = vand.u32 2147483647, %v292_v35  ;;  %v413_v46 = vadd.f32 %v412_v40, %v402_v27  ;;  %v302_v0 = vand.u32 2147483647, %v294_v38 }
  0xac   : > { %v303_v3 = vand.u32 2147483647, %v295_v39  ;;  %v417_v47 = vrot.slane %v410_v1, 1  ;;  %v304_v48 = vand.u32 2147483647, %v296_v41 }
  0xad   : > { %v305_v2 = vadd.f32 %v299_v44, %v297_v42  ;;  %v308_v49 = vadd.f32 %v300_v45, %v298_v43  ;;  %v418_v5 = vrot.slane %v413_v46, 1  ;;  %v288_v27 = vld [vmem:[#allocation2] sm:$0x1]  ;;  %v394_v28 = vld [vmem:[#allocation3] sm:$0x1] }
  0xae   : > { %v436_v35 = vld [vmem:[#allocation4] sm:$0x1] }
  0xaf   : > { %v306_v50 = vadd.f32 %v305_v2, %v301_v4  ;;  %v309_v7 = vadd.f32 %v308_v49, %v302_v0  ;;  %v419_v51 = vsel %vm416_vm3, %v417_v47, %v418_v5  ;;  %v422_v52 = vsel %vm416_vm3, %v418_v5, 0.0 }
  0xb0   : > { %v423_v6 = vadd.f32 %v422_v52, %v419_v51 }
  0xb1   : > { %v307_v53 = vadd.f32 %v306_v50, %v303_v3  ;;  %v310_v54 = vadd.f32 %v309_v7, %v304_v48 }
  0xb3   : > { %v311_v55 = vadd.f32 %v310_v54, %v307_v53 }
  0xb5   : > { %312 = vadd.xlane.f32.xlu1 %v311_v55 }
  0xd4   : > { %424 = vadd.xlane.f32.xlu2 %v423_v6 }
 0x105   : > { %v463_v56 = vpop.permute.xlu2 %462 }
 0x106   : > { %v469_v58 = vsel %vm468_vm4, %v463_v56, 0.0 }
 0x11d   : > { %v465_v57 = vpop.permute.xlu0 %464 }
 0x11e   : > { %v470_v59 = vsel %vm468_vm4, %v465_v57, 0.0 }
 0x11f   : > { %v471_v60 = vadd.f32 %v470_v59, %v469_v58 }
 0x121   : > { %472 = vadd.xlane.f32.xlu0 %v471_v60 }
 0x128   : > { %v313_v63 = vpop.xlane.xlu1 %312 }
 0x129   : > { %v314_v9 = vrot.slane %v313_v63, 4 }
 0x12b   : > { %v315_v11 = vadd.f32 %v314_v9, %v313_v63 }
 0x12d   : > { %v316_v12 = vrot.slane %v315_v11, 2 }
 0x12f   : > { %v317_v14 = vadd.f32 %v316_v12, %v315_v11 }
 0x131   : > { %v318_v15 = vrot.slane %v317_v14, 1 }
 0x133   : > { %v319_v17 = vadd.f32 %v318_v15, %v317_v14 }
 0x135   : > { %634 = vpush %v319_v17 }
 0x147   : > { %v425_v61 = vpop.xlane.xlu2 %424 }
 0x148   : > { %v426_v62 = vrot.slane %v425_v61, 4 }
 0x14a   : > { %v427_v8 = vadd.f32 %v426_v62, %v425_v61 }
 0x14c   : > { %v428_v10 = vrot.slane %v427_v8, 2 }
 0x14e   : > { %v429_v13 = vadd.f32 %v428_v10, %v427_v8 }
 0x150   : > { %v430_v16 = vrot.slane %v429_v13, 1 }
 0x152   : > { %v431_v18 = vadd.f32 %v430_v16, %v429_v13 }
 0x154   : > { %636 = vpush %v431_v18 }
 0x166   : > { %s635_s6 = spop %634 }
 0x167   : > { %v321_v29 = vstv %s635_s6 }
 0x168   : > { %v322_v30 = vadd.f32 %v321_v29, %v288_v27 }
 0x16a   : > { %324 = vst.msk [vmem:[#allocation2] sm:$0x1] %vm268_vm5, %v322_v30 }
 0x171   : > { %v487_v33 = vld [vmem:[#allocation2] sm:$0x1] }
 0x172   : > { %v488_v34 = vmul.f32 6.1035156e-05, %v487_v33 }
 0x174   : > { %494 = vst.msk [vmem:[%s260_s10] sm:$0x1] %vm268_vm5, %v488_v34 }
 0x185   : > { %s637_s7 = spop %636 }
 0x186   : > { %v433_v31 = vstv %s637_s7 }
 0x187   : > { %v434_v32 = vadd.f32 %v433_v31, %v394_v28 }
 0x189   : > { %435 = vst.msk [vmem:[#allocation3] sm:$0x1] %vm268_vm5, %v434_v32 }
 0x190   : > { %v489_v38 = vld [vmem:[#allocation3] sm:$0x1] }
 0x191   : > { %v490_v40 = vmul.f32 1.3020834e-05, %v489_v38 }
 0x194   : > { %v473_v20 = vpop.xlane.xlu0 %472 }
 0x195   : > { %v474_v21 = vrot.slane %v473_v20, 4 }
 0x197   : > { %v475_v22 = vadd.f32 %v474_v21, %v473_v20 }
 0x199   : > { %v476_v23 = vrot.slane %v475_v22, 2 }
 0x19b   : > { %v477_v24 = vadd.f32 %v476_v23, %v475_v22 }
 0x19d   : > { %v478_v25 = vrot.slane %v477_v24, 1 }
 0x19f   : > { %v479_v26 = vadd.f32 %v478_v25, %v477_v24 }
 0x1a1   : > { %638 = vpush %v479_v26 }
 0x1d2   : > { %s639_s11 = spop %638 }
 0x1d3   : > { %v481_v36 = vstv %s639_s11 }
 0x1d4   : > { %v482_v37 = vadd.f32 %v481_v36, %v436_v35 }
 0x1d6   : > { %483 = vst.msk [vmem:[#allocation4] sm:$0x1] %vm268_vm5, %v482_v37 }
 0x1dd   : > { %v491_v39 = vld [vmem:[#allocation4] sm:$0x1] }
 0x1de   : > { %v492_v41 = vmul.f32 1.230315e-05, %v491_v39 }
 0x1e0   : > { %v493_v42 = vadd.f32 %v492_v41, %v490_v40 }
 0x1e2   : > { %495 = vst.msk [vmem:[%s263_s20] sm:$0x1] %vm268_vm5, %v493_v42 }
 0x1e3 PF: > { %s20_s17 = sadd.s32 1, %s819_s17   ;;  %s1050_s12 = smov %s803_s13 }
 0x1e4   : > { %p17_p0 = scmp.ge.s32.totalorder %s20_s17, 4   ;;  %s1051_s13 = smov %s807_s14 }
 0x1e5   : > { %s1052_s14 = smov %s895_s24  ;;  %s1053_s15 = smov %s815_s16 }
 0x1e6   : > { %s1054_s16 = smov %s1056_s19  ;;  %19 = sbr.rel (!%p17_p0) target bundleno = 6 (0x6), region = 101 }
 0x1eb   :  { %525 = vsyncpa [#allocation6], 1 }
 0x1ec   :  { %527 = vsyncpa [#allocation6 + $0x1], 1 }
 0x1ed   :  { %528 = vsyncpa [#allocation8], 1 }
 0x1ee   :  { %530 = vsyncpa [#allocation8 + $0x1], 1 }

</bundles_post_ra>
